<compile_context>
chip_gen: v7x
topology: tpu7x:2x2x1
jax: 0.10.0
libtpu: 0.0.40
codegen_flags: <defaults>
</compile_context>

<pallas_src>
import functools

import jax
import jax.numpy as jnp
from jax.experimental import pallas as pl
from jax.experimental.pallas import tpu as pltpu

LANE = 128          # TPU lane width: all feature dims padded to this
_NEG = -1e30        # mask value for padded logits in the fused log_softmax
_XW_RESIDENT_BYTES = 8 * 1024 * 1024   # budget (incl. double buffer) for resident XW


def _round_up(x, m):
    return ((x + m - 1) // m) * m


def _pick_tile(n, candidates):
    for c in candidates:
        if c <= n and n % c == 0:
            return c
    return n


# -----------------------------------------------------------------------------
# Kernel 1: feature transform  XW = X @ W   (row-tiled, lane-dense, bf16 out)
# -----------------------------------------------------------------------------
def _xw_kernel(x_ref, w_ref, o_ref):
    o_ref[...] = jnp.dot(
        x_ref[...], w_ref[...], preferred_element_type=jnp.float32
    ).astype(o_ref.dtype)


def feature_transform(x, w, *, tm):
    n_pad, d_in_pad = x.shape
    f_pad = w.shape[1]
    return pl.pallas_call(
        _xw_kernel,
        out_shape=jax.ShapeDtypeStruct((n_pad, f_pad), jnp.bfloat16),
        grid_spec=pltpu.PrefetchScalarGridSpec(
            num_scalar_prefetch=0,
            grid=(n_pad // tm,),
            in_specs=[
                pl.BlockSpec((tm, d_in_pad), lambda i: (i, 0)),
                pl.BlockSpec((d_in_pad, f_pad), lambda i: (0, 0)),  # W resident
            ],
            out_specs=pl.BlockSpec((tm, f_pad), lambda i: (i, 0)),
        ),
        compiler_params=pltpu.CompilerParams(dimension_semantics=("parallel",)),
    )(x, w)


# -----------------------------------------------------------------------------
# Kernel 2: aggregation  out = epilogue( A_hat @ XW + b )
#   grid = (row tiles, k tiles); f32 accumulator resident across the k axis.
#   XW is either fully VMEM-resident (sliced with pl.ds per k step) or streamed
#   as (tk, F) slabs.  Epilogue fuses bias, optional ReLU, optional masked
#   log_softmax.
# -----------------------------------------------------------------------------
def _agg_kernel(a_ref, xw_ref, b_ref, o_ref, acc_ref, *,
                tk, xw_resident, apply_relu, apply_log_softmax, d_valid):
    k = pl.program_id(1)

    @pl.when(k == 0)
    def _():
        acc_ref[...] = jnp.zeros_like(acc_ref)

    if xw_resident:
        start = pl.multiple_of(k * tk, tk)
        xw = xw_ref[pl.ds(start, tk), :]
    else:
        xw = xw_ref[...]

    acc_ref[...] += jnp.dot(a_ref[...], xw, preferred_element_type=jnp.float32)

    @pl.when(k == pl.num_programs(1) - 1)
    def _():
        out = acc_ref[...] + b_ref[...]
        if apply_relu:
            out = jnp.maximum(out, 0.0)
        if apply_log_softmax:
            # mask the padded feature lanes so they don't pollute max / sum-exp
            lane = jax.lax.broadcasted_iota(jnp.int32, out.shape, 1)
            out = jnp.where(lane < d_valid, out, _NEG)
            m = jnp.max(out, axis=1, keepdims=True)
            s = out - m
            lse = jnp.log(jnp.sum(jnp.exp(s), axis=1, keepdims=True))
            out = s - lse
        o_ref[...] = out.astype(o_ref.dtype)


def gcn_aggregate(a_hat, xw, b, *, apply_relu, log_softmax_valid,
                  tm, tk, out_dtype):
    n_pad = a_hat.shape[0]
    f_pad = xw.shape[1]

    # Keep XW fully VMEM-resident when it fits: it is then DMA'd from HBM once
    # for the whole grid instead of once per row tile (the re-streaming would
    # otherwise cost ~ (128/tm) x the A_hat traffic of this mem-bound kernel).
    xw_resident = (n_pad * f_pad * 2 * 2) <= _XW_RESIDENT_BYTES
    if xw_resident:
        xw_spec = pl.BlockSpec((n_pad, f_pad), lambda i, k: (0, 0))
    else:
        xw_spec = pl.BlockSpec((tk, f_pad), lambda i, k: (k, 0))

    kernel = functools.partial(
        _agg_kernel,
        tk=tk,
        xw_resident=xw_resident,
        apply_relu=apply_relu,
        apply_log_softmax=log_softmax_valid is not None,
        d_valid=0 if log_softmax_valid is None else int(log_softmax_valid),
    )
    return pl.pallas_call(
        kernel,
        out_shape=jax.ShapeDtypeStruct((n_pad, f_pad), out_dtype),
        grid_spec=pltpu.PrefetchScalarGridSpec(
            num_scalar_prefetch=0,
            grid=(n_pad // tm, n_pad // tk),
            in_specs=[
                pl.BlockSpec((tm, tk), lambda i, k: (i, k)),      # A_hat tile
                xw_spec,                                          # XW (resident or slab)
                pl.BlockSpec((1, f_pad), lambda i, k: (0, 0)),    # bias resident
            ],
            out_specs=pl.BlockSpec((tm, f_pad), lambda i, k: (i, 0)),
            scratch_shapes=[pltpu.VMEM((tm, f_pad), jnp.float32)],
        ),
        compiler_params=pltpu.CompilerParams(
            dimension_semantics=("parallel", "arbitrary")),
    )(a_hat, xw, b)


# -----------------------------------------------------------------------------
# Plain-JAX glue: GCN normalization and parameter setup
# -----------------------------------------------------------------------------
def gcn_normalize(edge_index, num_nodes, num_nodes_pad):
    """Dense padded A_hat = D^-1/2 (A + I) D^-1/2 (PyG GCNConv defaults), bf16."""
    src, dst = edge_index[0], edge_index[1]
    loop = jnp.arange(num_nodes, dtype=edge_index.dtype)
    src = jnp.concatenate([src, loop])
    dst = jnp.concatenate([dst, loop])
    a = jnp.zeros((num_nodes_pad, num_nodes_pad), jnp.float32).at[dst, src].add(1.0)
    deg = a.sum(axis=1)
    d_inv_sqrt = jnp.where(deg > 0, 1.0 / jnp.sqrt(deg), 0.0)
    a_hat = d_inv_sqrt[:, None] * a * d_inv_sqrt[None, :]
    return a_hat.astype(jnp.bfloat16)


def glorot(key, shape):
    limit = jnp.sqrt(6.0 / (shape[0] + shape[1]))
    return jax.random.uniform(key, shape, jnp.float32, -limit, limit)


def _pad_weight(w, rows, cols):
    out = jnp.zeros((rows, cols), jnp.bfloat16)
    return out.at[: w.shape[0], : w.shape[1]].set(w.astype(jnp.bfloat16))


class Net:
    """JAX/Pallas port of the PyTorch Net(D_in, D_out, conv_number)."""

    HIDDEN = 16

    def __init__(self, d_in, d_out, conv_number, key):
        assert d_out <= LANE and self.HIDDEN <= LANE
        self.d_in = d_in
        self.d_out = d_out
        self.conv_number = conv_number
        self.d_in_pad = _round_up(d_in, LANE)
        self.f_pad = LANE  # hidden(16) and d_out both live in one lane-dense tile

        k1, k2, k3, k4 = jax.random.split(key, 4)
        self.w1 = _pad_weight(glorot(k1, (d_in, self.HIDDEN)), self.d_in_pad, self.f_pad)
        self.w2 = _pad_weight(glorot(k2, (self.HIDDEN, d_out)), self.f_pad, self.f_pad)
        self.w3 = _pad_weight(glorot(k3, (self.HIDDEN, self.HIDDEN)), self.f_pad, self.f_pad)
        self.w4 = _pad_weight(glorot(k4, (d_in, d_out)), self.d_in_pad, self.f_pad)
        zeros_b = jnp.zeros((1, self.f_pad), jnp.float32)
        self.b1 = zeros_b
        self.b2 = zeros_b
        self.b3 = zeros_b
        self.b4 = zeros_b

        # jit the whole forward so the normalization / padding glue fuses and
        # the three pallas_calls dispatch without per-op Python overhead.
        self._jit_forward = jax.jit(self._forward)

    def _forward(self, x, edge_index):
        n = x.shape[0]
        n_pad = _round_up(n, LANE)
        # Tile sizes: big enough to amortize per-grid-step overhead, small
        # enough to fit the v5e 16 MiB default scoped VMEM / v7x 64 MiB VMEM.
        tm = _pick_tile(n_pad, (512, 256, 128))
        tk = _pick_tile(n_pad, (1024, 512, 256, 128))

        a_hat = gcn_normalize(edge_index, n, n_pad)

        # pad node features to [n_pad, d_in_pad], cast to bf16 for the MXU
        x_p = jnp.zeros((n_pad, self.d_in_pad), jnp.bfloat16)
        x_p = x_p.at[:n, : self.d_in].set(x.astype(jnp.bfloat16))

        def layer(h, w, b, *, relu, final):
            xw = feature_transform(h, w, tm=tm)
            return gcn_aggregate(
                a_hat, xw, b,
                apply_relu=relu,
                log_softmax_valid=self.d_out if final else None,
                tm=tm, tk=tk,
                out_dtype=jnp.float32 if final else jnp.bfloat16,
            )

        if self.conv_number == 1:
            h = layer(x_p, self.w4, self.b4, relu=False, final=True)
        else:
            # conv1 -> relu -> dropout(eval: identity)
            h = layer(x_p, self.w1, self.b1, relu=True, final=False)
            for _ in range(self.conv_number - 2):
                # conv3 (same weights reused, as in the PyTorch module) -> relu
                h = layer(h, self.w3, self.b3, relu=True, final=False)
            # conv2 -> fused log_softmax(dim=1)
            h = layer(h, self.w2, self.b2, relu=False, final=True)

        return h[:n, : self.d_out]

    def __call__(self, x, edge_index):
        return self._jit_forward(x, edge_index)


# -----------------------------------------------------------------------------
# Pure-JAX reference (same bf16-rounded parameters, f32 math) for verification
# -----------------------------------------------------------------------------
def reference_forward(net, x, edge_index):
    n = x.shape[0]
    src, dst = edge_index[0], edge_index[1]
    loop = jnp.arange(n, dtype=edge_index.dtype)
    src = jnp.concatenate([src, loop])
    dst = jnp.concatenate([dst, loop])
    a = jnp.zeros((n, n), jnp.float32).at[dst, src].add(1.0)
    deg = a.sum(axis=1)
    dis = jnp.where(deg > 0, 1.0 / jnp.sqrt(deg), 0.0)
    a_hat = dis[:, None] * a * dis[None, :]

    def conv(h, w):
        return a_hat @ (h @ w)

    w1 = net.w1[: net.d_in, : Net.HIDDEN].astype(jnp.float32)
    w2 = net.w2[: Net.HIDDEN, : net.d_out].astype(jnp.float32)
    w3 = net.w3[: Net.HIDDEN, : Net.HIDDEN].astype(jnp.float32)
    w4 = net.w4[: net.d_in, : net.d_out].astype(jnp.float32)

    if net.conv_number == 1:
        h = conv(x, w4)
    else:
        h = jnp.maximum(conv(x, w1), 0.0)
        for _ in range(net.conv_number - 2):
            h = jnp.maximum(conv(h, w3), 0.0)
        h = conv(h, w2)
    return jax.nn.log_softmax(h, axis=1)


# -----------------------------------------------------------------------------
# Demo
# -----------------------------------------------------------------------------
if __name__ == "__main__":
    N = 8          # number of graph nodes
    D_IN = 16      # input feature dim
    D_OUT = 8      # output classes
    CONV_NUMBER = 3

    key = jax.random.PRNGKey(0)
    kx, kp = jax.random.split(key)

    # Node features [N, D_IN]
    x = jax.random.normal(kx, (N, D_IN), jnp.float32)

    # Bidirectional ring graph: edge_index [2, 2N]
    idx = jnp.arange(N, dtype=jnp.int32)
    nxt = (idx + 1) % N
    edge_index = jnp.stack(
        [jnp.concatenate([idx, nxt]), jnp.concatenate([nxt, idx])], axis=0
    )

    net = Net(D_IN, D_OUT, CONV_NUMBER, kp)
    out = net(x, edge_index)
    out = jax.block_until_ready(out)

    assert out.shape == (N, D_OUT)
    # rows of log_softmax must exp-sum to 1
    assert jnp.allclose(jnp.sum(jnp.exp(out), axis=1), 1.0, atol=1e-4)
    # match the pure-JAX reference (bf16 intermediates -> loose tolerance)
    ref = reference_forward(net, x, edge_index)
    assert jnp.max(jnp.abs(out - ref)) < 0.1
    print("KERNEL_OK")
</pallas_src>

<mosaic_0001>
module attributes {stable_mosaic.version = 11 : i64} {
  func.func @_xw_kernel(%arg0: i32, %arg1: memref<128x128xbf16, #tpu.memory_space<vmem>>, %arg2: memref<128x128xbf16, #tpu.memory_space<vmem>>, %arg3: memref<128x128xbf16, #tpu.memory_space<vmem>>) attributes {dimension_semantics = [#tpu.dimension_semantics<parallel>], iteration_bounds = array<i64: 1>, scalar_prefetch = 0 : i64, scratch_operands = 0 : i64, tpu.core_type = #tpu.core_type<tc>, window_params = [{transform_indices = @transform_0, window_bounds = array<i64: 128, 128>}, {pipeline_mode = #tpu.pipeline_mode<synchronous>, transform_indices = @transform_1, window_bounds = array<i64: 128, 128>}, {transform_indices = @transform_2, window_bounds = array<i64: 128, 128>}]} {
    %c0 = arith.constant 0 : index
    %c0_0 = arith.constant 0 : index
    %0 = vector.load %arg1[%c0, %c0_0] : memref<128x128xbf16, #tpu.memory_space<vmem>>, vector<128x128xbf16>
    %c0_1 = arith.constant 0 : index
    %c0_2 = arith.constant 0 : index
    %1 = vector.load %arg2[%c0_1, %c0_2] : memref<128x128xbf16, #tpu.memory_space<vmem>>, vector<128x128xbf16>
    %cst = arith.constant dense<0.000000e+00> : vector<128x128xf32>
    %2 = tpu.matmul %0, %1, %cst {dimension_numbers = #tpu.dot_dimension_numbers<[1], [0], [0], [1], [0, 0, 1, 1], [], []>} : vector<128x128xbf16>, vector<128x128xbf16>, vector<128x128xf32> -> vector<128x128xf32>
    %3 = arith.truncf %2 : vector<128x128xf32> to vector<128x128xbf16>
    %c0_3 = arith.constant 0 : index
    %c0_4 = arith.constant 0 : index
    %4 = vector.load %arg3[%c0_3, %c0_4] : memref<128x128xbf16, #tpu.memory_space<vmem>>, vector<128x128xbf16>
    tpu.vector_store %arg3[%c0_3, %c0_4], %3 {strides = array<i32>} : memref<128x128xbf16, #tpu.memory_space<vmem>>, vector<128x128xbf16>,
    return
  }
  func.func @transform_0(%arg0: i32) -> (i32, i32) {
    %c0_i32 = arith.constant 0 : i32
    %c0_i32_0 = arith.constant 0 : i32
    return %arg0, %c0_i32 : i32, i32
  }
  func.func @transform_1(%arg0: i32) -> (i32, i32) {
    %c0_i32 = arith.constant 0 : i32
    %c0_i32_0 = arith.constant 0 : i32
    %c0_i32_1 = arith.constant 0 : i32
    return %c0_i32, %c0_i32_0 : i32, i32
  }
  func.func @transform_2(%arg0: i32) -> (i32, i32) {
    %c0_i32 = arith.constant 0 : i32
    %c0_i32_0 = arith.constant 0 : i32
    return %arg0, %c0_i32 : i32, i32
  }
}

module attributes {stable_mosaic.version = 11 : i64} {
  func.func @_agg_kernel(%arg0: i32, %arg1: i32, %arg2: memref<128x128xbf16, #tpu.memory_space<vmem>>, %arg3: memref<128x128xbf16, #tpu.memory_space<vmem>>, %arg4: memref<1x128xf32, #tpu.memory_space<vmem>>, %arg5: memref<128x128xbf16, #tpu.memory_space<vmem>>, %arg6: memref<128x128xf32, #tpu.memory_space<vmem>>) attributes {dimension_semantics = [#tpu.dimension_semantics<parallel>, #tpu.dimension_semantics<arbitrary>], iteration_bounds = array<i64: 1, 1>, scalar_prefetch = 0 : i64, scratch_operands = 1 : i64, tpu.core_type = #tpu.core_type<tc>, window_params = [{transform_indices = @transform_0, window_bounds = array<i64: 128, 128>}, {pipeline_mode = #tpu.pipeline_mode<synchronous>, transform_indices = @transform_1, window_bounds = array<i64: 128, 128>}, {pipeline_mode = #tpu.pipeline_mode<synchronous>, transform_indices = @transform_2, window_bounds = array<i64: 1, 128>}, {transform_indices = @transform_3, window_bounds = array<i64: 128, 128>}]} {
    %c0_i32 = arith.constant 0 : i32
    %0 = arith.cmpi eq, %arg1, %c0_i32 : i32
    %1 = arith.extui %0 : i1 to i32
    %c0_i32_0 = arith.constant 0 : i32
    %2 = arith.cmpi ne, %1, %c0_i32_0 : i32
    scf.if %2 {
      %cst_9 = arith.constant 0.000000e+00 : f32
      %15 = vector.broadcast %cst_9 : f32 to vector<128x128xf32>
      %c0_10 = arith.constant 0 : index
      %c0_11 = arith.constant 0 : index
      %16 = vector.load %arg6[%c0_10, %c0_11] : memref<128x128xf32, #tpu.memory_space<vmem>>, vector<128x128xf32>
      tpu.vector_store %arg6[%c0_10, %c0_11], %15 {strides = array<i32>} : memref<128x128xf32, #tpu.memory_space<vmem>>, vector<128x128xf32>,
    } else {
    }
    %c128_i32 = arith.constant 128 : i32
    %3 = arith.muli %arg1, %c128_i32 : i32
    %4 = tpu.assume_multiple %3, 128 : i32
    %5 = arith.index_cast %4 : i32 to index
    %c0 = arith.constant 0 : index
    %6 = vector.load %arg3[%5, %c0] : memref<128x128xbf16, #tpu.memory_space<vmem>>, vector<128x128xbf16>
    %c0_1 = arith.constant 0 : index
    %c0_2 = arith.constant 0 : index
    %7 = vector.load %arg6[%c0_1, %c0_2] : memref<128x128xf32, #tpu.memory_space<vmem>>, vector<128x128xf32>
    %c0_3 = arith.constant 0 : index
    %c0_4 = arith.constant 0 : index
    %8 = vector.load %arg2[%c0_3, %c0_4] : memref<128x128xbf16, #tpu.memory_space<vmem>>, vector<128x128xbf16>
    %cst = arith.constant dense<0.000000e+00> : vector<128x128xf32>
    %9 = tpu.matmul %8, %6, %cst {dimension_numbers = #tpu.dot_dimension_numbers<[1], [0], [0], [1], [0, 0, 1, 1], [], []>} : vector<128x128xbf16>, vector<128x128xbf16>, vector<128x128xf32> -> vector<128x128xf32>
    %10 = arith.addf %7, %9 : vector<128x128xf32>
    %c0_5 = arith.constant 0 : index
    %c0_6 = arith.constant 0 : index
    %11 = vector.load %arg6[%c0_5, %c0_6] : memref<128x128xf32, #tpu.memory_space<vmem>>, vector<128x128xf32>
    tpu.vector_store %arg6[%c0_5, %c0_6], %10 {strides = array<i32>} : memref<128x128xf32, #tpu.memory_space<vmem>>, vector<128x128xf32>,
    %c0_i32_7 = arith.constant 0 : i32
    %12 = arith.cmpi eq, %arg1, %c0_i32_7 : i32
    %13 = arith.extui %12 : i1 to i32
    %c0_i32_8 = arith.constant 0 : i32
    %14 = arith.cmpi ne, %13, %c0_i32_8 : i32
    scf.if %14 {
      %c0_9 = arith.constant 0 : index
      %c0_10 = arith.constant 0 : index
      %15 = vector.load %arg6[%c0_9, %c0_10] : memref<128x128xf32, #tpu.memory_space<vmem>>, vector<128x128xf32>
      %c0_11 = arith.constant 0 : index
      %c0_12 = arith.constant 0 : index
      %16 = vector.load %arg4[%c0_11, %c0_12] : memref<1x128xf32, #tpu.memory_space<vmem>>, vector<1x128xf32>
      %17 = vector.broadcast %16 : vector<1x128xf32> to vector<128x128xf32>
      %18 = arith.addf %15, %17 : vector<128x128xf32>
      %cst_13 = arith.constant 0.000000e+00 : f32
      %19 = vector.broadcast %cst_13 : f32 to vector<128x128xf32>
      %20 = arith.maximumf %18, %19 : vector<128x128xf32>
      %21 = arith.truncf %20 : vector<128x128xf32> to vector<128x128xbf16>
      %c0_14 = arith.constant 0 : index
      %c0_15 = arith.constant 0 : index
      %22 = vector.load %arg5[%c0_14, %c0_15] : memref<128x128xbf16, #tpu.memory_space<vmem>>, vector<128x128xbf16>
      tpu.vector_store %arg5[%c0_14, %c0_15], %21 {strides = array<i32>} : memref<128x128xbf16, #tpu.memory_space<vmem>>, vector<128x128xbf16>,
    } else {
    }
    return
  }
  func.func @transform_0(%arg0: i32, %arg1: i32) -> (i32, i32) {
    %c0_i32 = arith.constant 0 : i32
    return %arg0, %arg1 : i32, i32
  }
  func.func @transform_1(%arg0: i32, %arg1: i32) -> (i32, i32) {
    %c0_i32 = arith.constant 0 : i32
    %c0_i32_0 = arith.constant 0 : i32
    %c0_i32_1 = arith.constant 0 : i32
    return %c0_i32, %c0_i32_0 : i32, i32
  }
  func.func @transform_2(%arg0: i32, %arg1: i32) -> (i32, i32) {
    %c0_i32 = arith.constant 0 : i32
    %c0_i32_0 = arith.constant 0 : i32
    %c0_i32_1 = arith.constant 0 : i32
    return %c0_i32, %c0_i32_0 : i32, i32
  }
  func.func @transform_3(%arg0: i32, %arg1: i32) -> (i32, i32) {
    %c0_i32 = arith.constant 0 : i32
    %c0_i32_0 = arith.constant 0 : i32
    return %arg0, %c0_i32 : i32, i32
  }
}

module attributes {stable_mosaic.version = 11 : i64} {
  func.func @_agg_kernel(%arg0: i32, %arg1: i32, %arg2: memref<128x128xbf16, #tpu.memory_space<vmem>>, %arg3: memref<128x128xbf16, #tpu.memory_space<vmem>>, %arg4: memref<1x128xf32, #tpu.memory_space<vmem>>, %arg5: memref<128x128xf32, #tpu.memory_space<vmem>>, %arg6: memref<128x128xf32, #tpu.memory_space<vmem>>) attributes {dimension_semantics = [#tpu.dimension_semantics<parallel>, #tpu.dimension_semantics<arbitrary>], iteration_bounds = array<i64: 1, 1>, scalar_prefetch = 0 : i64, scratch_operands = 1 : i64, tpu.core_type = #tpu.core_type<tc>, window_params = [{transform_indices = @transform_0, window_bounds = array<i64: 128, 128>}, {pipeline_mode = #tpu.pipeline_mode<synchronous>, transform_indices = @transform_1, window_bounds = array<i64: 128, 128>}, {pipeline_mode = #tpu.pipeline_mode<synchronous>, transform_indices = @transform_2, window_bounds = array<i64: 1, 128>}, {transform_indices = @transform_3, window_bounds = array<i64: 128, 128>}]} {
    %c0_i32 = arith.constant 0 : i32
    %0 = arith.cmpi eq, %arg1, %c0_i32 : i32
    %1 = arith.extui %0 : i1 to i32
    %c0_i32_0 = arith.constant 0 : i32
    %2 = arith.cmpi ne, %1, %c0_i32_0 : i32
    scf.if %2 {
      %cst_9 = arith.constant 0.000000e+00 : f32
      %15 = vector.broadcast %cst_9 : f32 to vector<128x128xf32>
      %c0_10 = arith.constant 0 : index
      %c0_11 = arith.constant 0 : index
      %16 = vector.load %arg6[%c0_10, %c0_11] : memref<128x128xf32, #tpu.memory_space<vmem>>, vector<128x128xf32>
      tpu.vector_store %arg6[%c0_10, %c0_11], %15 {strides = array<i32>} : memref<128x128xf32, #tpu.memory_space<vmem>>, vector<128x128xf32>,
    } else {
    }
    %c128_i32 = arith.constant 128 : i32
    %3 = arith.muli %arg1, %c128_i32 : i32
    %4 = tpu.assume_multiple %3, 128 : i32
    %5 = arith.index_cast %4 : i32 to index
    %c0 = arith.constant 0 : index
    %6 = vector.load %arg3[%5, %c0] : memref<128x128xbf16, #tpu.memory_space<vmem>>, vector<128x128xbf16>
    %c0_1 = arith.constant 0 : index
    %c0_2 = arith.constant 0 : index
    %7 = vector.load %arg6[%c0_1, %c0_2] : memref<128x128xf32, #tpu.memory_space<vmem>>, vector<128x128xf32>
    %c0_3 = arith.constant 0 : index
    %c0_4 = arith.constant 0 : index
    %8 = vector.load %arg2[%c0_3, %c0_4] : memref<128x128xbf16, #tpu.memory_space<vmem>>, vector<128x128xbf16>
    %cst = arith.constant dense<0.000000e+00> : vector<128x128xf32>
    %9 = tpu.matmul %8, %6, %cst {dimension_numbers = #tpu.dot_dimension_numbers<[1], [0], [0], [1], [0, 0, 1, 1], [], []>} : vector<128x128xbf16>, vector<128x128xbf16>, vector<128x128xf32> -> vector<128x128xf32>
    %10 = arith.addf %7, %9 : vector<128x128xf32>
    %c0_5 = arith.constant 0 : index
    %c0_6 = arith.constant 0 : index
    %11 = vector.load %arg6[%c0_5, %c0_6] : memref<128x128xf32, #tpu.memory_space<vmem>>, vector<128x128xf32>
    tpu.vector_store %arg6[%c0_5, %c0_6], %10 {strides = array<i32>} : memref<128x128xf32, #tpu.memory_space<vmem>>, vector<128x128xf32>,
    %c0_i32_7 = arith.constant 0 : i32
    %12 = arith.cmpi eq, %arg1, %c0_i32_7 : i32
    %13 = arith.extui %12 : i1 to i32
    %c0_i32_8 = arith.constant 0 : i32
    %14 = arith.cmpi ne, %13, %c0_i32_8 : i32
    scf.if %14 {
      %c0_9 = arith.constant 0 : index
      %c0_10 = arith.constant 0 : index
      %15 = vector.load %arg6[%c0_9, %c0_10] : memref<128x128xf32, #tpu.memory_space<vmem>>, vector<128x128xf32>
      %c0_11 = arith.constant 0 : index
      %c0_12 = arith.constant 0 : index
      %16 = vector.load %arg4[%c0_11, %c0_12] : memref<1x128xf32, #tpu.memory_space<vmem>>, vector<1x128xf32>
      %17 = vector.broadcast %16 : vector<1x128xf32> to vector<128x128xf32>
      %18 = arith.addf %15, %17 : vector<128x128xf32>
      %19 = tpu.iota {dimensions = array<i32: 1>} : vector<128x128xi32>
      %c8_i32 = arith.constant 8 : i32
      %20 = vector.broadcast %c8_i32 : i32 to vector<128x128xi32>
      %21 = arith.cmpi slt, %19, %20 : vector<128x128xi32>
      %cst_13 = arith.constant -1.000000e+30 : f32
      %22 = vector.broadcast %cst_13 : f32 to vector<128x128xf32>
      %23 = arith.select %21, %18, %22 : vector<128x128xi1>, vector<128x128xf32>
      %cst_14 = arith.constant dense<0xFF800000> : vector<128xf32>
      %24 = vector.multi_reduction <maximumf>, %23, %cst_14 [1] : vector<128x128xf32> to vector<128xf32>
      %25 = vector.shape_cast %24 : vector<128xf32> to vector<128x1xf32>
      %26 = vector.broadcast %25 : vector<128x1xf32> to vector<128x128xf32>
      %27 = arith.subf %23, %26 : vector<128x128xf32>
      %28 = math.exp %27 : vector<128x128xf32>
      %cst_15 = arith.constant dense<0.000000e+00> : vector<128xf32>
      %29 = vector.multi_reduction <add>, %28, %cst_15 [1] : vector<128x128xf32> to vector<128xf32>
      %30 = vector.shape_cast %29 : vector<128xf32> to vector<128x1xf32>
      %31 = math.log %30 : vector<128x1xf32>
      %32 = vector.broadcast %31 : vector<128x1xf32> to vector<128x128xf32>
      %33 = arith.subf %27, %32 : vector<128x128xf32>
      %c0_16 = arith.constant 0 : index
      %c0_17 = arith.constant 0 : index
      %34 = vector.load %arg5[%c0_16, %c0_17] : memref<128x128xf32, #tpu.memory_space<vmem>>, vector<128x128xf32>
      tpu.vector_store %arg5[%c0_16, %c0_17], %33 {strides = array<i32>} : memref<128x128xf32, #tpu.memory_space<vmem>>, vector<128x128xf32>,
    } else {
    }
    return
  }
  func.func @transform_0(%arg0: i32, %arg1: i32) -> (i32, i32) {
    %c0_i32 = arith.constant 0 : i32
    return %arg0, %arg1 : i32, i32
  }
  func.func @transform_1(%arg0: i32, %arg1: i32) -> (i32, i32) {
    %c0_i32 = arith.constant 0 : i32
    %c0_i32_0 = arith.constant 0 : i32
    %c0_i32_1 = arith.constant 0 : i32
    return %c0_i32, %c0_i32_0 : i32, i32
  }
  func.func @transform_2(%arg0: i32, %arg1: i32) -> (i32, i32) {
    %c0_i32 = arith.constant 0 : i32
    %c0_i32_0 = arith.constant 0 : i32
    %c0_i32_1 = arith.constant 0 : i32
    return %c0_i32, %c0_i32_0 : i32, i32
  }
  func.func @transform_3(%arg0: i32, %arg1: i32) -> (i32, i32) {
    %c0_i32 = arith.constant 0 : i32
    %c0_i32_0 = arith.constant 0 : i32
    return %arg0, %c0_i32 : i32, i32
  }
}

</mosaic_0001>

<bundles_post_ra>
// kernel: _forward.6
= control target key start
LH: loop header
LB: loop body
LE: loop exit
PB: predicated region body
PF: predicated region fallthrough
CT: control target
= control target key end

     0   :  { %s583_s1 = inlined_call_operand.vmem [shape: bf16[128,128], index: 1, kind: input, shape index: {}]   ;;  %s584_s0 = inlined_call_operand.vmem [shape: bf16[128,128], index: 0, kind: input, shape index: {}]   ;;  %s585_s2 = inlined_call_operand.vmem [shape: bf16[128,128], index: 2, kind: output, shape index: {}]  }
   0x1   :  { %v480_v0 = vld [vmem:[%s583_s1] sm:$0xff]   ;;  %v481_v1 = vld [vmem:[%s583_s1 + $0x8] sm:$0xff]   ;;  %v482_v2 = vld [vmem:[%s583_s1 + $0x10] sm:$0xff]  }
   0x2   :  { %432 = vmatprep.subr.bf16.mxu0 %v480_v0  ;;  %464 = vmatprep.subr.bf16.mxu1 %v480_v0  ;;  %v483_v3 = vld [vmem:[%s583_s1 + $0x18] sm:$0xff]   ;;  %v488_v4 = vld [vmem:[%s584_s0] sm:$0xff]   ;;  %v485_v7 = vld [vmem:[%s583_s1 + $0x28] sm:$0xff]  }
   0x3   :  { %433 = vmatpush3.bf16.msra.mxu0 %v480_v0  ;;  %472 = vmatpush3.bf16.msra.mxu1 %v480_v0  ;;  %v489_v5 = vld [vmem:[%s584_s0 + $0x20] sm:$0xff]   ;;  %v486_v8 = vld [vmem:[%s583_s1 + $0x30] sm:$0xff]   ;;  %v487_v9 = vld [vmem:[%s583_s1 + $0x38] sm:$0xff]  }
   0x4   :  { %434 = vmatprep.subr.bf16.mxu0 %v481_v1  ;;  %465 = vmatprep.subr.bf16.mxu1 %v481_v1  ;;  %v484_v6 = vld [vmem:[%s583_s1 + $0x20] sm:$0xff]   ;;  %v490_v10 = vld [vmem:[%s584_s0 + $0x8] sm:$0xff]   ;;  %v492_v12 = vld [vmem:[%s584_s0 + $0x10] sm:$0xff]  }
   0x5   :  { %448 = vmatprep.mubr.bf16.mxu0 %v488_v4  ;;  %456 = vmatprep.mubr.bf16.mxu1 %v489_v5  ;;  %v491_v11 = vld [vmem:[%s584_s0 + $0x28] sm:$0xff]   ;;  %v493_v13 = vld [vmem:[%s584_s0 + $0x30] sm:$0xff]   ;;  %v494_v14 = vld [vmem:[%s584_s0 + $0x18] sm:$0xff]  }
   0x6   :  { %v495_v15 = vld [vmem:[%s584_s0 + $0x38] sm:$0xff]  }
   0x7   :  { %435 = vmatpush3.bf16.msra.mxu0 %v481_v1  ;;  %473 = vmatpush3.bf16.msra.mxu1 %v481_v1 }
   0x8   :  { %436 = vmatprep.subr.bf16.mxu0 %v482_v2  ;;  %466 = vmatprep.subr.bf16.mxu1 %v482_v2 }
   0xb   :  { %437 = vmatpush3.bf16.msra.mxu0 %v482_v2  ;;  %474 = vmatpush3.bf16.msra.mxu1 %v482_v2 }
   0xc   :  { %438 = vmatprep.subr.bf16.mxu0 %v483_v3  ;;  %467 = vmatprep.subr.bf16.mxu1 %v483_v3 }
   0xf   :  { %439 = vmatpush3.bf16.msra.mxu0 %v483_v3  ;;  %475 = vmatpush3.bf16.msra.mxu1 %v483_v3 }
  0x10   :  { %440 = vmatprep.subr.bf16.mxu0 %v484_v6  ;;  %468 = vmatprep.subr.bf16.mxu1 %v484_v6 }
  0x13   :  { %441 = vmatpush3.bf16.msra.mxu0 %v484_v6  ;;  %476 = vmatpush3.bf16.msra.mxu1 %v484_v6 }
  0x14   :  { %442 = vmatprep.subr.bf16.mxu0 %v485_v7  ;;  %469 = vmatprep.subr.bf16.mxu1 %v485_v7 }
  0x17   :  { %443 = vmatpush3.bf16.msra.mxu0 %v485_v7  ;;  %477 = vmatpush3.bf16.msra.mxu1 %v485_v7 }
  0x18   :  { %444 = vmatprep.subr.bf16.mxu0 %v486_v8  ;;  %470 = vmatprep.subr.bf16.mxu1 %v486_v8 }
  0x1b   :  { %445 = vmatpush3.bf16.msra.mxu0 %v486_v8  ;;  %478 = vmatpush3.bf16.msra.mxu1 %v486_v8 }
  0x1c   :  { %446 = vmatprep.subr.bf16.mxu0 %v487_v9  ;;  %471 = vmatprep.subr.bf16.mxu1 %v487_v9 }
  0x1f   :  { %447 = vmatpush3.bf16.msra.mxu0 %v487_v9  ;;  %479 = vmatpush3.bf16.msra.mxu1 %v487_v9 }
  0x22   :  { %449 = vmatmul.mubr.bf16.vlgmr.msra.gmra.mrb[0].mxu0 %v490_v10  ;;  %457 = vmatmul.mubr.bf16.vlgmr.msra.gmra.mrb[0].mxu1 %v491_v11 }
  0x23   :  { %452 = vmatprep.mubr.bf16.mxu0 %v492_v12  ;;  %460 = vmatprep.mubr.bf16.mxu1 %v493_v13 }
  0x2a   :  { %453 = vmatmul.mubr.bf16.gmra.mrb[4].mxu0 %v494_v14  ;;  %461 = vmatmul.mubr.bf16.gmra.mrb[4].mxu1 %v495_v15 }
  0xf5   :  { %v450_v16 = vpop.f32.mrb[0].mxu0  ;;  %v458_v17 = vpop.f32.mrb[0].mxu1 }
  0xf6   :  { %v174_v18 = vpop.f32.mrb[1].mxu0  ;;  %v206_v19 = vpop.f32.mrb[1].mxu1 }
  0xf7   :  { %v451_v20 = vpop.f32.mrb[2].mxu0  ;;  %v459_v21 = vpop.f32.mrb[2].mxu1 }
  0xf8   :  { %v377_v22 = vpack.c.bf16 %v451_v20, %v450_v16  ;;  %v397_v23 = vpack.c.bf16 %v459_v21, %v458_v17  ;;  %v177_v24 = vpop.f32.mrb[3].mxu0  ;;  %v209_v25 = vpop.f32.mrb[3].mxu1 }
  0xf9   :  { %v372_v26 = vpack.c.bf16 %v177_v24, %v174_v18  ;;  %v392_v27 = vpack.c.bf16 %v209_v25, %v206_v19 }
  0xfa   :  { %409 = vst [vmem:[%s585_s2 + $0x8] sm:$0xff] %v377_v22   ;;  %413 = vst [vmem:[%s585_s2 + $0x28] sm:$0xff] %v397_v23  }
  0xfb   :  { %373 = vst [vmem:[%s585_s2] sm:$0xff] %v372_v26   ;;  %412 = vst [vmem:[%s585_s2 + $0x20] sm:$0xff] %v392_v27  }
  0xfd   :  { %v454_v28 = vpop.f32.mrb[4].mxu0  ;;  %v462_v29 = vpop.f32.mrb[4].mxu1 }
  0xfe   :  { %v190_v30 = vpop.f32.mrb[5].mxu0  ;;  %v222_v31 = vpop.f32.mrb[5].mxu1 }
  0xff   :  { %v455_v32 = vpop.f32.mrb[6].mxu0  ;;  %v463_v33 = vpop.f32.mrb[6].mxu1 }
 0x100   :  { %v387_v34 = vpack.c.bf16 %v455_v32, %v454_v28  ;;  %v407_v35 = vpack.c.bf16 %v463_v33, %v462_v29  ;;  %v193_v36 = vpop.f32.mrb[7].mxu0  ;;  %v225_v37 = vpop.f32.mrb[7].mxu1 }
 0x101   :  { %v382_v38 = vpack.c.bf16 %v193_v36, %v190_v30  ;;  %v402_v39 = vpack.c.bf16 %v225_v37, %v222_v31 }
 0x102   :  { %411 = vst [vmem:[%s585_s2 + $0x18] sm:$0xff] %v387_v34   ;;  %415 = vst [vmem:[%s585_s2 + $0x38] sm:$0xff] %v407_v35  }
 0x103   :  { %410 = vst [vmem:[%s585_s2 + $0x10] sm:$0xff] %v382_v38   ;;  %414 = vst [vmem:[%s585_s2 + $0x30] sm:$0xff] %v402_v39  }

// kernel: _forward.11
= control target key start
LH: loop header
LB: loop body
LE: loop exit
PB: predicated region body
PF: predicated region fallthrough
CT: control target
= control target key end

     0   :  { %v355_v16 = vlaneseq  ;;  %s951_s1 = inlined_call_operand.vmem [shape: bf16[128,128], index: 1, kind: input, shape index: {}]   ;;  %s952_s0 = inlined_call_operand.vmem [shape: bf16[128,128], index: 0, kind: input, shape index: {}]   ;;  %s953_s2 = inlined_call_operand.vmem [shape: f32[1,128], index: 2, kind: input, shape index: {}]   ;;  %s954_s3 = inlined_call_operand.vmem [shape: f32[128,128], index: 3, kind: output, shape index: {}]  }
   0x1   :  { %v637_v0 = vld [vmem:[%s951_s1] sm:$0xff]   ;;  %v638_v1 = vld [vmem:[%s951_s1 + $0x8] sm:$0xff]   ;;  %v639_v2 = vld [vmem:[%s951_s1 + $0x10] sm:$0xff]  }
   0x2   :  { %589 = vmatprep.subr.bf16.mxu0 %v637_v0  ;;  %621 = vmatprep.subr.bf16.mxu1 %v637_v0  ;;  %v640_v3 = vld [vmem:[%s951_s1 + $0x18] sm:$0xff]   ;;  %v645_v4 = vld [vmem:[%s952_s0] sm:$0xff]   ;;  %v642_v7 = vld [vmem:[%s951_s1 + $0x28] sm:$0xff]   ;;  %v785_v17 = vand.u32 127, %v355_v16 }
   0x3   :  { %590 = vmatpush3.bf16.msra.mxu0 %v637_v0  ;;  %629 = vmatpush3.bf16.msra.mxu1 %v637_v0  ;;  %v646_v5 = vld [vmem:[%s952_s0 + $0x20] sm:$0xff]   ;;  %v643_v8 = vld [vmem:[%s951_s1 + $0x30] sm:$0xff]   ;;  %v644_v9 = vld [vmem:[%s951_s1 + $0x38] sm:$0xff]  }
   0x4   :  { %591 = vmatprep.subr.bf16.mxu0 %v638_v1  ;;  %622 = vmatprep.subr.bf16.mxu1 %v638_v1  ;;  %v641_v6 = vld [vmem:[%s951_s1 + $0x20] sm:$0xff]   ;;  %v647_v10 = vld [vmem:[%s952_s0 + $0x8] sm:$0xff]   ;;  %v649_v12 = vld [vmem:[%s952_s0 + $0x10] sm:$0xff]   ;;  %vm357_vm0 = vcmp.lt.s32.totalorder %v785_v17, 8 }
   0x5   :  { %605 = vmatprep.mubr.bf16.mxu0 %v645_v4  ;;  %613 = vmatprep.mubr.bf16.mxu1 %v646_v5  ;;  %v648_v11 = vld [vmem:[%s952_s0 + $0x28] sm:$0xff]   ;;  %v651_v13 = vld [vmem:[%s952_s0 + $0x30] sm:$0xff]   ;;  %v650_v14 = vld [vmem:[%s952_s0 + $0x18] sm:$0xff]  }
   0x6   :  { %v652_v15 = vld [vmem:[%s952_s0 + $0x38] sm:$0xff]   ;;  %v572_v18 = vld [vmem:[%s953_s2] ss:$0 sm:$0xff] }
   0x7   :  { %592 = vmatpush3.bf16.msra.mxu0 %v638_v1  ;;  %630 = vmatpush3.bf16.msra.mxu1 %v638_v1 }
   0x8   :  { %593 = vmatprep.subr.bf16.mxu0 %v639_v2  ;;  %623 = vmatprep.subr.bf16.mxu1 %v639_v2 }
   0xb   :  { %594 = vmatpush3.bf16.msra.mxu0 %v639_v2  ;;  %631 = vmatpush3.bf16.msra.mxu1 %v639_v2 }
   0xc   :  { %595 = vmatprep.subr.bf16.mxu0 %v640_v3  ;;  %624 = vmatprep.subr.bf16.mxu1 %v640_v3 }
   0xf   :  { %596 = vmatpush3.bf16.msra.mxu0 %v640_v3  ;;  %632 = vmatpush3.bf16.msra.mxu1 %v640_v3 }
  0x10   :  { %597 = vmatprep.subr.bf16.mxu0 %v641_v6  ;;  %625 = vmatprep.subr.bf16.mxu1 %v641_v6 }
  0x13   :  { %598 = vmatpush3.bf16.msra.mxu0 %v641_v6  ;;  %633 = vmatpush3.bf16.msra.mxu1 %v641_v6 }
  0x14   :  { %599 = vmatprep.subr.bf16.mxu0 %v642_v7  ;;  %626 = vmatprep.subr.bf16.mxu1 %v642_v7 }
  0x17   :  { %600 = vmatpush3.bf16.msra.mxu0 %v642_v7  ;;  %634 = vmatpush3.bf16.msra.mxu1 %v642_v7 }
  0x18   :  { %601 = vmatprep.subr.bf16.mxu0 %v643_v8  ;;  %627 = vmatprep.subr.bf16.mxu1 %v643_v8 }
  0x1b   :  { %602 = vmatpush3.bf16.msra.mxu0 %v643_v8  ;;  %635 = vmatpush3.bf16.msra.mxu1 %v643_v8 }
  0x1c   :  { %603 = vmatprep.subr.bf16.mxu0 %v644_v9  ;;  %628 = vmatprep.subr.bf16.mxu1 %v644_v9 }
  0x1f   :  { %604 = vmatpush3.bf16.msra.mxu0 %v644_v9  ;;  %636 = vmatpush3.bf16.msra.mxu1 %v644_v9 }
  0x22   :  { %606 = vmatmul.mubr.bf16.vlgmr.msra.gmra.mrb[0].mxu0 %v647_v10  ;;  %614 = vmatmul.mubr.bf16.vlgmr.msra.gmra.mrb[0].mxu1 %v648_v11 }
  0x23   :  { %609 = vmatprep.mubr.bf16.mxu0 %v649_v12  ;;  %617 = vmatprep.mubr.bf16.mxu1 %v651_v13 }
  0x2a   :  { %610 = vmatmul.mubr.bf16.gmra.mrb[4].mxu0 %v650_v14  ;;  %618 = vmatmul.mubr.bf16.gmra.mrb[4].mxu1 %v652_v15 }
  0xf5   :  { %v607_v19 = vpop.f32.mrb[0].mxu0  ;;  %v615_v20 = vpop.f32.mrb[0].mxu1 }
  0xf6   :  { %v341_v21 = vadd.f32 %v607_v19, %v572_v18  ;;  %v349_v22 = vadd.f32 %v615_v20, %v572_v18  ;;  %v218_v23 = vpop.f32.mrb[1].mxu0  ;;  %v250_v24 = vpop.f32.mrb[1].mxu1 }
  0xf7   :  { %v608_v25 = vpop.f32.mrb[2].mxu0  ;;  %v616_v26 = vpop.f32.mrb[2].mxu1  ;;  %v339_v27 = vadd.f32 %v572_v18, %v218_v23  ;;  %v347_v33 = vadd.f32 %v572_v18, %v250_v24 }
  0xf8   :  { %v342_v28 = vadd.f32 %v608_v25, %v572_v18  ;;  %v221_v29 = vpop.f32.mrb[3].mxu0  ;;  %v253_v30 = vpop.f32.mrb[3].mxu1  ;;  %v368_v31 = vsel %vm357_vm0, %v349_v22, -1e+30  ;;  %v360_v32 = vsel %vm357_vm0, %v341_v21, -1e+30  ;;  %v350_v34 = vadd.f32 %v616_v26, %v572_v18 }
  0xf9   :  { %394 = vmax.xlane.f32.xlu0 %v368_v31  ;;  %378 = vmax.xlane.f32.xlu1 %v360_v32  ;;  %v358_v35 = vsel %vm357_vm0, %v339_v27, -1e+30  ;;  %v340_v43 = vadd.f32 %v572_v18, %v221_v29  ;;  %v348_v44 = vadd.f32 %v572_v18, %v253_v30  ;;  %v366_v45 = vsel %vm357_vm0, %v347_v33, -1e+30 }
  0xfa   :  { %v361_v36 = vsel %vm357_vm0, %v342_v28, -1e+30  ;;  %v369_v46 = vsel %vm357_vm0, %v350_v34, -1e+30 }
  0xfb   :  { %v367_v51 = vsel %vm357_vm0, %v348_v44, -1e+30  ;;  %v359_v52 = vsel %vm357_vm0, %v340_v43, -1e+30 }
  0xfd   :  { %374 = vmax.xlane.f32.xlu0 %v358_v35  ;;  %380 = vmax.xlane.f32.xlu1 %v361_v36  ;;  %v611_v37 = vpop.f32.mrb[4].mxu0  ;;  %v619_v38 = vpop.f32.mrb[4].mxu1 }
  0xfe   :  { %v234_v39 = vpop.f32.mrb[5].mxu0  ;;  %v266_v40 = vpop.f32.mrb[5].mxu1  ;;  %v345_v49 = vadd.f32 %v611_v37, %v572_v18  ;;  %v353_v63 = vadd.f32 %v619_v38, %v572_v18 }
  0xff   :  { %v612_v41 = vpop.f32.mrb[6].mxu0  ;;  %v620_v42 = vpop.f32.mrb[6].mxu1  ;;  %v343_v55 = vadd.f32 %v572_v18, %v234_v39  ;;  %v351_v57 = vadd.f32 %v572_v18, %v266_v40 }
 0x100   :  { %v237_v47 = vpop.f32.mrb[7].mxu0  ;;  %v269_v48 = vpop.f32.mrb[7].mxu1  ;;  %v346_v50 = vadd.f32 %v612_v41, %v572_v18  ;;  %v364_v53 = vsel %vm357_vm0, %v345_v49, -1e+30  ;;  %v354_v0 = vadd.f32 %v620_v42, %v572_v18  ;;  %v827_v1 = vsel %vm357_vm0, %v353_v63, -1e+30 }
 0x101   :  { %390 = vmax.xlane.f32.xlu0 %v366_v45  ;;  %396 = vmax.xlane.f32.xlu1 %v369_v46  ;;  %v344_v56 = vadd.f32 %v572_v18, %v237_v47  ;;  %v352_v58 = vadd.f32 %v572_v18, %v269_v48  ;;  %v362_v59 = vsel %vm357_vm0, %v343_v55, -1e+30  ;;  %v817_v61 = vsel %vm357_vm0, %v351_v57, -1e+30 }
 0x102   :  { %v365_v54 = vsel %vm357_vm0, %v346_v50, -1e+30  ;;  %v831_v2 = vsel %vm357_vm0, %v354_v0, -1e+30 }
 0x103   :  { %v363_v60 = vsel %vm357_vm0, %v344_v56, -1e+30  ;;  %v821_v62 = vsel %vm357_vm0, %v352_v58, -1e+30 }
 0x105   :  { %392 = vmax.xlane.f32.xlu1 %v367_v51  ;;  %376 = vmax.xlane.f32.xlu0 %v359_v52 }
 0x109   :  { %386 = vmax.xlane.f32.xlu0 %v364_v53  ;;  %388 = vmax.xlane.f32.xlu1 %v365_v54 }
 0x10d   :  { %382 = vmax.xlane.f32.xlu0 %v362_v59  ;;  %384 = vmax.xlane.f32.xlu1 %v363_v60 }
 0x111   :  { %398 = vmax.xlane.f32.xlu0 %v817_v61  ;;  %400 = vmax.xlane.f32.xlu1 %v821_v62 }
 0x115   :  { %402 = vmax.xlane.f32.xlu0 %v827_v1  ;;  %404 = vmax.xlane.f32.xlu1 %v831_v2 }
 0x186   :  { %v395_v3 = vpop.xlane.xlu0 %394  ;;  %v379_v4 = vpop.xlane.xlu1 %378 }
 0x187   :  { %v835_v5 = vsub.f32 %v368_v31, %v395_v3  ;;  %v837_v6 = vsub.f32 %v360_v32, %v379_v4 }
 0x189   :  { %v426_v7 = vmul.f32 1.442695, %v837_v6  ;;  %v442_v10 = vmul.f32 1.442695, %v835_v5 }
 0x18a   :  { %v375_v8 = vpop.xlane.xlu0 %374  ;;  %v381_v9 = vpop.xlane.xlu1 %380 }
 0x18b   :  { %v841_v11 = vsub.f32 %v358_v35, %v375_v8  ;;  %v843_v12 = vsub.f32 %v361_v36, %v381_v9  ;;  %653 = vpow2.f32 %v426_v7 }
 0x18c   :  { %655 = vpow2.f32 %v442_v10 }
 0x18d   :  { %v428_v13 = vmul.f32 1.442695, %v843_v12  ;;  %v422_v16 = vmul.f32 1.442695, %v841_v11 }
 0x18e   :  { %v391_v14 = vpop.xlane.xlu0 %390  ;;  %v397_v15 = vpop.xlane.xlu1 %396 }
 0x18f   :  { %v847_v17 = vsub.f32 %v366_v45, %v391_v14  ;;  %v849_v18 = vsub.f32 %v369_v46, %v397_v15  ;;  %657 = vpow2.f32 %v428_v13 }
 0x190   :  { %659 = vpow2.f32 %v422_v16 }
 0x191   :  { %v444_v19 = vmul.f32 1.442695, %v849_v18  ;;  %v438_v22 = vmul.f32 1.442695, %v847_v17 }
 0x192   :  { %v393_v20 = vpop.xlane.xlu1 %392  ;;  %v377_v21 = vpop.xlane.xlu0 %376 }
 0x193   :  { %v853_v23 = vsub.f32 %v359_v52, %v377_v21  ;;  %661 = vpow2.f32 %v444_v19  ;;  %v855_v24 = vsub.f32 %v367_v51, %v393_v20 }
 0x194   :  { %663 = vpow2.f32 %v438_v22 }
 0x195   :  { %v424_v25 = vmul.f32 1.442695, %v853_v23  ;;  %v654_v26 = vpop.eup %653  ;;  %v440_v30 = vmul.f32 1.442695, %v855_v24 }
 0x196   :  { %v387_v27 = vpop.xlane.xlu0 %386  ;;  %v389_v28 = vpop.xlane.xlu1 %388  ;;  %458 = vadd.xlane.f32.xlu0 %v654_v26 }
 0x197   :  { %v858_v29 = vsub.f32 %v364_v53, %v387_v27  ;;  %665 = vpow2.f32 %v424_v25  ;;  %v861_v31 = vsub.f32 %v365_v54, %v389_v28  ;;  %v656_v32 = vpop.eup %655 }
 0x199   :  { %v434_v33 = vmul.f32 1.442695, %v858_v29  ;;  %v658_v34 = vpop.eup %657  ;;  %v436_v38 = vmul.f32 1.442695, %v861_v31 }
 0x19a   :  { %v383_v35 = vpop.xlane.xlu0 %382  ;;  %v385_v36 = vpop.xlane.xlu1 %384  ;;  %474 = vadd.xlane.f32.xlu0 %v656_v32  ;;  %460 = vadd.xlane.f32.xlu1 %v658_v34 }
 0x19b   :  { %667 = vpow2.f32 %v434_v33  ;;  %v864_v37 = vsub.f32 %v362_v59, %v383_v35  ;;  %v867_v39 = vsub.f32 %v363_v60, %v385_v36  ;;  %v660_v40 = vpop.eup %659 }
 0x19c   :  { %669 = vpow2.f32 %v440_v30 }
 0x19d   :  { %v430_v41 = vmul.f32 1.442695, %v864_v37  ;;  %v662_v42 = vpop.eup %661  ;;  %v432_v46 = vmul.f32 1.442695, %v867_v39 }
 0x19e   :  { %v399_v43 = vpop.xlane.xlu0 %398  ;;  %v401_v44 = vpop.xlane.xlu1 %400  ;;  %454 = vadd.xlane.f32.xlu0 %v660_v40  ;;  %476 = vadd.xlane.f32.xlu1 %v662_v42 }
 0x19f   :  { %671 = vpow2.f32 %v430_v41  ;;  %v871_v45 = vsub.f32 %v817_v61, %v399_v43  ;;  %v875_v47 = vsub.f32 %v821_v62, %v401_v44  ;;  %v664_v48 = vpop.eup %663 }
 0x1a0   :  { %673 = vpow2.f32 %v436_v38 }
 0x1a1   :  { %v446_v49 = vmul.f32 1.442695, %v871_v45  ;;  %v666_v50 = vpop.eup %665  ;;  %v448_v54 = vmul.f32 1.442695, %v875_v47 }
 0x1a2   :  { %v403_v51 = vpop.xlane.xlu0 %402  ;;  %v405_v52 = vpop.xlane.xlu1 %404  ;;  %470 = vadd.xlane.f32.xlu0 %v664_v48  ;;  %456 = vadd.xlane.f32.xlu1 %v666_v50 }
 0x1a3   :  { %675 = vpow2.f32 %v446_v49  ;;  %v879_v53 = vsub.f32 %v827_v1, %v403_v51  ;;  %v883_v55 = vsub.f32 %v831_v2, %v405_v52 }
 0x1a4   :  { %677 = vpow2.f32 %v432_v46 }
 0x1a5   :  { %v668_v56 = vpop.eup %667  ;;  %v450_v57 = vmul.f32 1.442695, %v879_v53  ;;  %v452_v59 = vmul.f32 1.442695, %v883_v55 }
 0x1a6   :  { %v670_v58 = vpop.eup %669  ;;  %466 = vadd.xlane.f32.xlu0 %v668_v56 }
 0x1a7   :  { %679 = vpow2.f32 %v450_v57  ;;  %472 = vadd.xlane.f32.xlu1 %v670_v58 }
 0x1a8   :  { %681 = vpow2.f32 %v448_v54 }
 0x1a9   :  { %v672_v60 = vpop.eup %671  ;;  %683 = vpow2.f32 %v452_v59 }
 0x1aa   :  { %v674_v61 = vpop.eup %673  ;;  %462 = vadd.xlane.f32.xlu0 %v672_v60 }
 0x1ab   :  { %468 = vadd.xlane.f32.xlu1 %v674_v61 }
 0x1ad   :  { %v676_v62 = vpop.eup %675 }
 0x1ae   :  { %v678_v63 = vpop.eup %677  ;;  %478 = vadd.xlane.f32.xlu0 %v676_v62 }
 0x1af   :  { %464 = vadd.xlane.f32.xlu1 %v678_v63 }
 0x1b1   :  { %v680_v0 = vpop.eup %679 }
 0x1b2   :  { %v682_v1 = vpop.eup %681  ;;  %482 = vadd.xlane.f32.xlu0 %v680_v0 }
 0x1b3   :  { %480 = vadd.xlane.f32.xlu1 %v682_v1  ;;  %v684_v2 = vpop.eup %683 }
 0x1b7   :  { %484 = vadd.xlane.f32.xlu1 %v684_v2 }
 0x223   :  { %v459_v3 = vpop.xlane.xlu0 %458 }
 0x224   :  { %685 = vlog2.f32 %v459_v3 }
 0x227   :  { %v475_v4 = vpop.xlane.xlu0 %474  ;;  %v461_v7 = vpop.xlane.xlu1 %460 }
 0x228   :  { %687 = vlog2.f32 %v475_v4 }
 0x229   :  { %689 = vlog2.f32 %v461_v7 }
 0x22b   :  { %v455_v8 = vpop.xlane.xlu0 %454  ;;  %v477_v9 = vpop.xlane.xlu1 %476 }
 0x22c   :  { %691 = vlog2.f32 %v455_v8 }
 0x22d   :  { %693 = vlog2.f32 %v477_v9 }
 0x22e   :  { %v686_v10 = vpop.eup %685 }
 0x22f   :  { %v491_v13 = vmul.f32 0.6931472, %v686_v10  ;;  %v471_v14 = vpop.xlane.xlu0 %470  ;;  %v457_v15 = vpop.xlane.xlu1 %456 }
 0x230   :  { %695 = vlog2.f32 %v471_v14 }
 0x231   :  { %v520_v16 = vsub.f32 %v837_v6, %v491_v13  ;;  %697 = vlog2.f32 %v457_v15 }
 0x232   :  { %v688_v19 = vpop.eup %687 }
 0x233   :  { %v690_v20 = vpop.eup %689  ;;  %536 = vst [vmem:[%s954_s3 + $0x10] sm:$0xff] %v520_v16  ;;  %v507_v21 = vmul.f32 0.6931472, %v688_v19  ;;  %v467_v22 = vpop.xlane.xlu0 %466 }
 0x234   :  { %v473_v25 = vpop.xlane.xlu1 %472  ;;  %v493_v26 = vmul.f32 0.6931472, %v690_v20  ;;  %699 = vlog2.f32 %v467_v22 }
 0x235   :  { %v528_v27 = vsub.f32 %v835_v5, %v507_v21  ;;  %701 = vlog2.f32 %v473_v25 }
 0x236   :  { %v692_v28 = vpop.eup %691  ;;  %v521_v30 = vsub.f32 %v843_v12, %v493_v26 }
 0x237   :  { %v694_v32 = vpop.eup %693  ;;  %544 = vst [vmem:[%s954_s3 + $0x50] sm:$0xff] %v528_v27  ;;  %v487_v6 = vmul.f32 0.6931472, %v692_v28  ;;  %v463_v33 = vpop.xlane.xlu0 %462 }
 0x238   :  { %v469_v34 = vpop.xlane.xlu1 %468  ;;  %537 = vst [vmem:[%s954_s3 + $0x18] sm:$0xff] %v521_v30  ;;  %v509_v35 = vmul.f32 0.6931472, %v694_v32  ;;  %703 = vlog2.f32 %v463_v33 }
 0x239   :  { %v518_v5 = vsub.f32 %v841_v11, %v487_v6  ;;  %705 = vlog2.f32 %v469_v34 }
 0x23a   :  { %v696_v36 = vpop.eup %695  ;;  %v529_v12 = vsub.f32 %v849_v18, %v509_v35 }
 0x23b   :  { %v698_v38 = vpop.eup %697  ;;  %534 = vst [vmem:[%s954_s3] sm:$0xff] %v518_v5  ;;  %v503_v40 = vmul.f32 0.6931472, %v696_v36  ;;  %v479_v41 = vpop.xlane.xlu0 %478 }
 0x23c   :  { %v465_v42 = vpop.xlane.xlu1 %464  ;;  %545 = vst [vmem:[%s954_s3 + $0x58] sm:$0xff] %v529_v12  ;;  %v489_v43 = vmul.f32 0.6931472, %v698_v38  ;;  %707 = vlog2.f32 %v479_v41 }
 0x23d   :  { %v526_v11 = vsub.f32 %v847_v17, %v503_v40  ;;  %709 = vlog2.f32 %v465_v42 }
 0x23e   :  { %v700_v44 = vpop.eup %699  ;;  %v519_v18 = vsub.f32 %v853_v23, %v489_v43 }
 0x23f   :  { %v702_v46 = vpop.eup %701  ;;  %542 = vst [vmem:[%s954_s3 + $0x40] sm:$0xff] %v526_v11  ;;  %v499_v48 = vmul.f32 0.6931472, %v700_v44  ;;  %v483_v49 = vpop.xlane.xlu0 %482 }
 0x240   :  { %v481_v50 = vpop.xlane.xlu1 %480  ;;  %535 = vst [vmem:[%s954_s3 + $0x8] sm:$0xff] %v519_v18  ;;  %v505_v51 = vmul.f32 0.6931472, %v702_v46  ;;  %711 = vlog2.f32 %v483_v49 }
 0x241   :  { %v524_v17 = vsub.f32 %v858_v29, %v499_v48  ;;  %713 = vlog2.f32 %v481_v50 }
 0x242   :  { %v704_v52 = vpop.eup %703  ;;  %v527_v23 = vsub.f32 %v855_v24, %v505_v51 }
 0x243   :  { %v706_v54 = vpop.eup %705  ;;  %540 = vst [vmem:[%s954_s3 + $0x30] sm:$0xff] %v524_v17  ;;  %v495_v56 = vmul.f32 0.6931472, %v704_v52 }
 0x244   :  { %v485_v57 = vpop.xlane.xlu1 %484  ;;  %543 = vst [vmem:[%s954_s3 + $0x48] sm:$0xff] %v527_v23  ;;  %v501_v58 = vmul.f32 0.6931472, %v706_v54 }
 0x245   :  { %715 = vlog2.f32 %v485_v57  ;;  %v522_v59 = vsub.f32 %v864_v37, %v495_v56 }
 0x246   :  { %v708_v29 = vpop.eup %707  ;;  %v525_v60 = vsub.f32 %v861_v31, %v501_v58 }
 0x247   :  { %v710_v61 = vpop.eup %709  ;;  %538 = vst [vmem:[%s954_s3 + $0x20] sm:$0xff] %v522_v59  ;;  %v511_v24 = vmul.f32 0.6931472, %v708_v29 }
 0x248   :  { %541 = vst [vmem:[%s954_s3 + $0x38] sm:$0xff] %v525_v60  ;;  %v497_v62 = vmul.f32 0.6931472, %v710_v61 }
 0x249   :  { %v530_v63 = vsub.f32 %v871_v45, %v511_v24 }
 0x24a   :  { %v712_v0 = vpop.eup %711  ;;  %v523_v1 = vsub.f32 %v867_v39, %v497_v62 }
 0x24b   :  { %v714_v37 = vpop.eup %713  ;;  %546 = vst [vmem:[%s954_s3 + $0x60] sm:$0xff] %v530_v63  ;;  %v515_v31 = vmul.f32 0.6931472, %v712_v0 }
 0x24c   :  { %539 = vst [vmem:[%s954_s3 + $0x28] sm:$0xff] %v523_v1  ;;  %v513_v2 = vmul.f32 0.6931472, %v714_v37 }
 0x24d   :  { %v532_v3 = vsub.f32 %v879_v53, %v515_v31 }
 0x24e   :  { %v531_v7 = vsub.f32 %v875_v47, %v513_v2 }
 0x24f   :  { %v716_v4 = vpop.eup %715  ;;  %548 = vst [vmem:[%s954_s3 + $0x70] sm:$0xff] %v532_v3 }
 0x250   :  { %v517_v39 = vmul.f32 0.6931472, %v716_v4  ;;  %547 = vst [vmem:[%s954_s3 + $0x68] sm:$0xff] %v531_v7 }
 0x252   :  { %v533_v45 = vsub.f32 %v883_v55, %v517_v39 }
 0x254   :  { %549 = vst [vmem:[%s954_s3 + $0x78] sm:$0xff] %v533_v45 }

// kernel: _forward.7
= control target key start
LH: loop header
LB: loop body
LE: loop exit
PB: predicated region body
PF: predicated region fallthrough
CT: control target
= control target key end

     0   :  { %s728_s1 = inlined_call_operand.vmem [shape: bf16[128,128], index: 1, kind: input, shape index: {}]   ;;  %s729_s0 = inlined_call_operand.vmem [shape: bf16[128,128], index: 0, kind: input, shape index: {}]   ;;  %s730_s2 = inlined_call_operand.vmem [shape: f32[1,128], index: 2, kind: input, shape index: {}]   ;;  %s731_s3 = inlined_call_operand.vmem [shape: bf16[128,128], index: 3, kind: output, shape index: {}]  }
   0x1   :  { %v617_v0 = vld [vmem:[%s728_s1] sm:$0xff]   ;;  %v618_v1 = vld [vmem:[%s728_s1 + $0x8] sm:$0xff]   ;;  %v619_v2 = vld [vmem:[%s728_s1 + $0x10] sm:$0xff]  }
   0x2   :  { %569 = vmatprep.subr.bf16.mxu0 %v617_v0  ;;  %601 = vmatprep.subr.bf16.mxu1 %v617_v0  ;;  %v620_v3 = vld [vmem:[%s728_s1 + $0x18] sm:$0xff]   ;;  %v625_v4 = vld [vmem:[%s729_s0] sm:$0xff]   ;;  %v622_v7 = vld [vmem:[%s728_s1 + $0x28] sm:$0xff]  }
   0x3   :  { %570 = vmatpush3.bf16.msra.mxu0 %v617_v0  ;;  %609 = vmatpush3.bf16.msra.mxu1 %v617_v0  ;;  %v626_v5 = vld [vmem:[%s729_s0 + $0x20] sm:$0xff]   ;;  %v623_v8 = vld [vmem:[%s728_s1 + $0x30] sm:$0xff]   ;;  %v624_v9 = vld [vmem:[%s728_s1 + $0x38] sm:$0xff]  }
   0x4   :  { %571 = vmatprep.subr.bf16.mxu0 %v618_v1  ;;  %602 = vmatprep.subr.bf16.mxu1 %v618_v1  ;;  %v621_v6 = vld [vmem:[%s728_s1 + $0x20] sm:$0xff]   ;;  %v627_v10 = vld [vmem:[%s729_s0 + $0x8] sm:$0xff]   ;;  %v629_v12 = vld [vmem:[%s729_s0 + $0x10] sm:$0xff]  }
   0x5   :  { %585 = vmatprep.mubr.bf16.mxu0 %v625_v4  ;;  %593 = vmatprep.mubr.bf16.mxu1 %v626_v5  ;;  %v628_v11 = vld [vmem:[%s729_s0 + $0x28] sm:$0xff]   ;;  %v630_v13 = vld [vmem:[%s729_s0 + $0x30] sm:$0xff]   ;;  %v631_v14 = vld [vmem:[%s729_s0 + $0x18] sm:$0xff]  }
   0x6   :  { %v632_v15 = vld [vmem:[%s729_s0 + $0x38] sm:$0xff]   ;;  %v473_v16 = vld [vmem:[%s730_s2] ss:$0 sm:$0xff] }
   0x7   :  { %572 = vmatpush3.bf16.msra.mxu0 %v618_v1  ;;  %610 = vmatpush3.bf16.msra.mxu1 %v618_v1 }
   0x8   :  { %573 = vmatprep.subr.bf16.mxu0 %v619_v2  ;;  %603 = vmatprep.subr.bf16.mxu1 %v619_v2 }
   0xb   :  { %574 = vmatpush3.bf16.msra.mxu0 %v619_v2  ;;  %611 = vmatpush3.bf16.msra.mxu1 %v619_v2 }
   0xc   :  { %575 = vmatprep.subr.bf16.mxu0 %v620_v3  ;;  %604 = vmatprep.subr.bf16.mxu1 %v620_v3 }
   0xf   :  { %576 = vmatpush3.bf16.msra.mxu0 %v620_v3  ;;  %612 = vmatpush3.bf16.msra.mxu1 %v620_v3 }
  0x10   :  { %577 = vmatprep.subr.bf16.mxu0 %v621_v6  ;;  %605 = vmatprep.subr.bf16.mxu1 %v621_v6 }
  0x13   :  { %578 = vmatpush3.bf16.msra.mxu0 %v621_v6  ;;  %613 = vmatpush3.bf16.msra.mxu1 %v621_v6 }
  0x14   :  { %579 = vmatprep.subr.bf16.mxu0 %v622_v7  ;;  %606 = vmatprep.subr.bf16.mxu1 %v622_v7 }
  0x17   :  { %580 = vmatpush3.bf16.msra.mxu0 %v622_v7  ;;  %614 = vmatpush3.bf16.msra.mxu1 %v622_v7 }
  0x18   :  { %581 = vmatprep.subr.bf16.mxu0 %v623_v8  ;;  %607 = vmatprep.subr.bf16.mxu1 %v623_v8 }
  0x1b   :  { %582 = vmatpush3.bf16.msra.mxu0 %v623_v8  ;;  %615 = vmatpush3.bf16.msra.mxu1 %v623_v8 }
  0x1c   :  { %583 = vmatprep.subr.bf16.mxu0 %v624_v9  ;;  %608 = vmatprep.subr.bf16.mxu1 %v624_v9 }
  0x1f   :  { %584 = vmatpush3.bf16.msra.mxu0 %v624_v9  ;;  %616 = vmatpush3.bf16.msra.mxu1 %v624_v9 }
  0x22   :  { %586 = vmatmul.mubr.bf16.vlgmr.msra.gmra.mrb[0].mxu0 %v627_v10  ;;  %594 = vmatmul.mubr.bf16.vlgmr.msra.gmra.mrb[0].mxu1 %v628_v11 }
  0x23   :  { %589 = vmatprep.mubr.bf16.mxu0 %v629_v12  ;;  %597 = vmatprep.mubr.bf16.mxu1 %v630_v13 }
  0x2a   :  { %590 = vmatmul.mubr.bf16.gmra.mrb[4].mxu0 %v631_v14  ;;  %598 = vmatmul.mubr.bf16.gmra.mrb[4].mxu1 %v632_v15 }
  0xf5   :  { %v587_v17 = vpop.f32.mrb[0].mxu0  ;;  %v595_v18 = vpop.f32.mrb[0].mxu1 }
  0xf6   :  { %v341_v19 = vadd.f32 %v587_v17, %v473_v16  ;;  %v349_v20 = vadd.f32 %v595_v18, %v473_v16  ;;  %v218_v21 = vpop.f32.mrb[1].mxu0  ;;  %v250_v22 = vpop.f32.mrb[1].mxu1 }
  0xf7   :  { %v339_v23 = vadd.f32 %v473_v16, %v218_v21  ;;  %v347_v24 = vadd.f32 %v473_v16, %v250_v22  ;;  %v588_v25 = vpop.f32.mrb[2].mxu0  ;;  %v596_v26 = vpop.f32.mrb[2].mxu1 }
  0xf8   :  { %v342_v27 = vadd.f32 %v588_v25, %v473_v16  ;;  %v350_v28 = vadd.f32 %v596_v26, %v473_v16  ;;  %v221_v29 = vpop.f32.mrb[3].mxu0  ;;  %v253_v30 = vpop.f32.mrb[3].mxu1  ;;  %v357_v33 = vmax.f32 %v341_v19, 0.0  ;;  %v365_v34 = vmax.f32 %v349_v20, 0.0 }
  0xf9   :  { %v340_v31 = vadd.f32 %v473_v16, %v221_v29  ;;  %v348_v32 = vadd.f32 %v473_v16, %v253_v30  ;;  %v355_v37 = vmax.f32 %v339_v23, 0.0  ;;  %v363_v38 = vmax.f32 %v347_v24, 0.0 }
  0xfa   :  { %v358_v35 = vmax.f32 %v342_v27, 0.0  ;;  %v366_v36 = vmax.f32 %v350_v28, 0.0 }
  0xfb   :  { %v356_v39 = vmax.f32 %v340_v31, 0.0  ;;  %v364_v40 = vmax.f32 %v348_v32, 0.0 }
  0xfc   :  { %v514_v41 = vpack.c.bf16 %v358_v35, %v357_v33  ;;  %v534_v42 = vpack.c.bf16 %v366_v36, %v365_v34 }
  0xfd   :  { %v509_v43 = vpack.c.bf16 %v356_v39, %v355_v37  ;;  %v529_v44 = vpack.c.bf16 %v364_v40, %v363_v38  ;;  %v591_v45 = vpop.f32.mrb[4].mxu0  ;;  %v599_v46 = vpop.f32.mrb[4].mxu1 }
  0xfe   :  { %546 = vst [vmem:[%s731_s3 + $0x8] sm:$0xff] %v514_v41   ;;  %550 = vst [vmem:[%s731_s3 + $0x28] sm:$0xff] %v534_v42   ;;  %v345_v47 = vadd.f32 %v591_v45, %v473_v16  ;;  %v353_v48 = vadd.f32 %v599_v46, %v473_v16  ;;  %v234_v49 = vpop.f32.mrb[5].mxu0  ;;  %v266_v50 = vpop.f32.mrb[5].mxu1 }
  0xff   :  { %510 = vst [vmem:[%s731_s3] sm:$0xff] %v509_v43   ;;  %549 = vst [vmem:[%s731_s3 + $0x20] sm:$0xff] %v529_v44   ;;  %v343_v51 = vadd.f32 %v473_v16, %v234_v49  ;;  %v351_v52 = vadd.f32 %v473_v16, %v266_v50  ;;  %v592_v53 = vpop.f32.mrb[6].mxu0  ;;  %v600_v54 = vpop.f32.mrb[6].mxu1 }
 0x100   :  { %v346_v55 = vadd.f32 %v592_v53, %v473_v16  ;;  %v354_v56 = vadd.f32 %v600_v54, %v473_v16  ;;  %v237_v57 = vpop.f32.mrb[7].mxu0  ;;  %v269_v58 = vpop.f32.mrb[7].mxu1  ;;  %v361_v61 = vmax.f32 %v345_v47, 0.0  ;;  %v369_v62 = vmax.f32 %v353_v48, 0.0 }
 0x101   :  { %v344_v59 = vadd.f32 %v473_v16, %v237_v57  ;;  %v352_v60 = vadd.f32 %v473_v16, %v269_v58  ;;  %v359_v1 = vmax.f32 %v343_v51, 0.0  ;;  %v367_v2 = vmax.f32 %v351_v52, 0.0 }
 0x102   :  { %v362_v63 = vmax.f32 %v346_v55, 0.0  ;;  %v370_v0 = vmax.f32 %v354_v56, 0.0 }
 0x103   :  { %v360_v3 = vmax.f32 %v344_v59, 0.0  ;;  %v368_v4 = vmax.f32 %v352_v60, 0.0 }
 0x104   :  { %v524_v5 = vpack.c.bf16 %v362_v63, %v361_v61  ;;  %v544_v6 = vpack.c.bf16 %v370_v0, %v369_v62 }
 0x105   :  { %v519_v7 = vpack.c.bf16 %v360_v3, %v359_v1  ;;  %v539_v8 = vpack.c.bf16 %v368_v4, %v367_v2 }
 0x106   :  { %548 = vst [vmem:[%s731_s3 + $0x18] sm:$0xff] %v524_v5   ;;  %552 = vst [vmem:[%s731_s3 + $0x38] sm:$0xff] %v544_v6  }
 0x107   :  { %547 = vst [vmem:[%s731_s3 + $0x10] sm:$0xff] %v519_v7   ;;  %551 = vst [vmem:[%s731_s3 + $0x30] sm:$0xff] %v539_v8  }

</bundles_post_ra>
